<compile_context>
chip_gen: v5e
topology: v5e:2x2
jax: 0.10.0
libtpu: 0.0.40
codegen_flags: <defaults>
</compile_context>

<pallas_src>
import numpy as np

import jax
import jax.numpy as jnp
from jax import lax
from jax.experimental import pallas as pl
from jax.experimental.pallas import tpu as pltpu

_VMEM = pl.BlockSpec(memory_space=pltpu.MemorySpace.VMEM)

CP = 16                  # uniform channel padding (sublane multiple, bf16-friendly)
KSINGLE = 9 * CP         # 144: im2col contraction depth for single-input convs
KDEC = 2 * KSINGLE       # 288: contraction depth for the merged decoder convs


# ----------------------------------------------------------------------------
# Host-side (numpy) construction of the small constant operator matrices.
# ----------------------------------------------------------------------------
def _bilinear_matrix_np(n):
    """(2n, n) matrix reproducing nn.Upsample(scale=2, bilinear, align_corners=False)."""
    A = np.zeros((2 * n, n), np.float32)
    for i in range(2 * n):
        src = max((i + 0.5) * 0.5 - 0.5, 0.0)
        i0 = min(int(np.floor(src)), n - 1)
        i1 = min(i0 + 1, n - 1)
        lam = src - i0
        A[i, i0] += 1.0 - lam
        A[i, i1] += lam
    return A


def _upsample_operator_np(nb, h, w):
    """(nb*h*w, nb*4*h*w) operator: y(C, M_out) = x(C, M_in) @ U  == bilinear 2x upsample."""
    K = np.kron(_bilinear_matrix_np(h), _bilinear_matrix_np(w))       # (4hw, hw)
    hw, hw4 = h * w, 4 * h * w
    U = np.zeros((nb * hw, nb * hw4), np.float32)
    for n in range(nb):
        U[n * hw:(n + 1) * hw, n * hw4:(n + 1) * hw4] = K.T
    return U


def _pool_selector_np(nb, h, w):
    """(nb*h*w, nb*(h//2)*(w//2)) 0/1 matrix selecting the top-left anchor of each 2x2 window."""
    ho, wo = h // 2, w // 2
    S = np.zeros((nb * h * w, nb * ho * wo), np.float32)
    for n in range(nb):
        for i in range(ho):
            for j in range(wo):
                S[n * h * w + 2 * i * w + 2 * j, n * ho * wo + i * wo + j] = 1.0
    return S


def _conv_masks_np(nb, h, w, dil):
    """(9, nb*h*w) 0/1 masks: conv tap t=ky*3+kx is in-bounds at flattened position m."""
    M = nb * h * w
    m = np.arange(M)
    hh = (m // w) % h
    ww = m % w
    out = np.zeros((9, M), np.float32)
    for ky in range(3):
        for kx in range(3):
            dy, dx = (ky - 1) * dil, (kx - 1) * dil
            out[ky * 3 + kx] = ((hh + dy >= 0) & (hh + dy < h)
                                & (ww + dx >= 0) & (ww + dx < w))
    return out


def _conv_tap_ops_np(nb, h, w, dil):
    """(9, M, M) shift+mask operators for the tiny 4x4 level:  patch_t = x @ T[t]."""
    M = nb * h * w
    T = np.zeros((9, M, M), np.float32)
    for ky in range(3):
        for kx in range(3):
            dy, dx = (ky - 1) * dil, (kx - 1) * dil
            t = ky * 3 + kx
            for n in range(nb):
                for i in range(h):
                    for j in range(w):
                        si, sj = i + dy, j + dx
                        if 0 <= si < h and 0 <= sj < w:
                            T[t, n * h * w + si * w + sj, n * h * w + i * w + j] = 1.0
    return T


# ----------------------------------------------------------------------------
# One-time runtime probe pinning down pltpu.roll's rotation direction.
# ----------------------------------------------------------------------------
def _probe_roll_direction():
    x = jnp.arange(8 * 256, dtype=jnp.float32).reshape(8, 256)

    def kern(x_ref, o_ref):
        o_ref[...] = pltpu.roll(x_ref[...], 3, axis=1)

    y = pl.pallas_call(kern, out_shape=jax.ShapeDtypeStruct((8, 256), jnp.float32),
                       in_specs=[_VMEM], out_specs=_VMEM)(x)
    y = np.asarray(jax.block_until_ready(y))
    xn = np.asarray(x)
    if np.array_equal(y, np.roll(xn, 3, axis=1)):
        return 1           # pltpu.roll(x, k)[i] == x[i - k]   (jnp.roll convention)
    if np.array_equal(y, np.roll(xn, -3, axis=1)):
        return -1          # pltpu.roll(x, k)[i] == x[i + k]
    raise RuntimeError("unexpected pltpu.roll semantics")


# ----------------------------------------------------------------------------
# Fused ResBlockU forward.
# ----------------------------------------------------------------------------
def make_resblocku(params, nb, h, w, mid, roll_dir):
    assert h % 4 == 0 and w % 4 == 0
    M16, M8, M4 = nb * h * w, nb * (h // 2) * (w // 2), nb * (h // 4) * (w // 4)
    W16, W8 = w, w // 2
    n_out = int(params["conv_in"]["w"].shape[2])

    # ---------------- host-side im2col weight / param packing ----------------
    def pack_w_single(p):
        wn = np.asarray(p["w"], np.float32)                 # (3, 3, cout, cin)
        cout, cin = wn.shape[2], wn.shape[3]
        W = np.zeros((CP, KDEC), np.float32)
        for ky in range(3):
            for kx in range(3):
                t = ky * 3 + kx
                W[:cout, t * CP:t * CP + cin] = wn[ky, kx]
        return W

    def pack_w_dec(p):
        wn = np.asarray(p["w"], np.float32)                 # cin = 2*mid (torch.cat order)
        cout = wn.shape[2]
        W = np.zeros((CP, KDEC), np.float32)
        for ky in range(3):
            for kx in range(3):
                t = ky * 3 + kx
                W[:cout, t * CP:t * CP + mid] = wn[ky, kx, :, :mid]
                W[:cout, KSINGLE + t * CP:KSINGLE + t * CP + mid] = wn[ky, kx, :, mid:]
        return W

    def pack_p(p):
        cout = int(p["b"].shape[0])
        P = np.zeros((CP, 4), np.float32)
        P[:cout, 0] = np.asarray(p["b"])
        P[:cout, 1] = np.asarray(p["g"])
        P[:cout, 2] = np.asarray(p["be"])
        return P

    order = ["conv_in", "conv1", "conv2", "conv3", "conv4", "dec3", "dec2", "dec1"]
    IW_IN, IW_1, IW_2, IW_3, IW_4, IW_D3, IW_D2, IW_D1 = range(8)
    w_stack = np.stack([pack_w_dec(params[k]) if k.startswith("dec") else pack_w_single(params[k])
                        for k in order])
    w_stack = jnp.asarray(w_stack, jnp.bfloat16)                                 # (8, 16, 288)
    p_stack = jnp.asarray(np.stack([pack_p(params[k]) for k in order]), jnp.float32)  # (8, 16, 4)

    m16 = jnp.asarray(_conv_masks_np(nb, h, w, 1), jnp.float32)                  # (9, M16)
    m8 = jnp.asarray(_conv_masks_np(nb, h // 2, w // 2, 1), jnp.float32)         # (9, M8)
    taps = jnp.asarray(np.concatenate([_conv_tap_ops_np(nb, h // 4, w // 4, 1),
                                       _conv_tap_ops_np(nb, h // 4, w // 4, 2)], axis=0),
                       jnp.bfloat16)                                             # (18, M4, M4)
    sel1 = jnp.asarray(_pool_selector_np(nb, h, w), jnp.bfloat16)                # (M16, M8)
    sel2 = jnp.asarray(_pool_selector_np(nb, h // 2, w // 2), jnp.bfloat16)      # (M8, M4)
    up3 = jnp.asarray(_upsample_operator_np(nb, h // 4, w // 4), jnp.bfloat16)   # (M4, M8)
    up2 = jnp.asarray(_upsample_operator_np(nb, h // 2, w // 2), jnp.bfloat16)   # (M8, M16)

    const_args = [w_stack, p_stack, m16, m8, taps, sel1, sel2, up3, up2]

    # --------------------------------- kernel ---------------------------------
    def kernel(x_ref, w_ref, p_ref, m16_ref, m8_ref, taps_ref,
               sel1_ref, sel2_ref, up3_ref, up2_ref, o_ref):
        bf16 = jnp.bfloat16

        def shift_lanes(x, s):
            # y[:, m] = x[:, m + s]   (wrap-around values are killed by masks / selectors)
            m = x.shape[1]
            k = (-s) % m if roll_dir == 1 else s % m
            return pltpu.roll(x, k, axis=1)

        def bmask_rows(mref, mlanes):
            # hoisted once per level: per-tap boundary masks, pre-broadcast to (CP, M)
            return [jnp.broadcast_to(mref[pl.ds(t, 1), :], (CP, mlanes)) for t in range(9)]

        bm16 = bmask_rows(m16_ref, M16)
        bm8 = bmask_rows(m8_ref, M8)

        def patches_roll(x, w_sp, bm):
            # im2col patch stack (9*CP, M): XLU lane-rolls + VPU masking, no matmuls.
            pieces = []
            for ky in range(3):
                for kx in range(3):
                    t = ky * 3 + kx
                    s = (ky - 1) * w_sp + (kx - 1)
                    pieces.append(x if s == 0 else shift_lanes(x, s) * bm[t])
            return jnp.concatenate(pieces, axis=0)

        def patches_tap(x, t_base):
            # 4x4 level: shift+mask folded into precomputed 0/1 (M4, M4) tap operators.
            xb = x.astype(bf16)
            pieces = [jnp.dot(xb, taps_ref[t_base + t], preferred_element_type=jnp.float32)
                      for t in range(9)]
            return jnp.concatenate(pieces, axis=0)

        def conv(patches, widx, k):
            # ONE MXU matmul per conv: (CP, k) bf16 x (k, M) bf16 -> f32.
            wmat = w_ref[widx][:, :k]
            return jnp.dot(wmat, patches.astype(bf16), preferred_element_type=jnp.float32)

        def bn_celu(acc, widx):
            # conv bias + BatchNorm2d (training-mode batch stats) + CELU(alpha=1).
            # sum and sum-of-squares fused into one cross-lane reduce.
            p = p_ref[widx]                              # (CP, 4) f32: [bias, gamma, beta, 0]
            c, mlanes = acc.shape
            y = acc + p[:, 0:1]
            st = jnp.concatenate([y, y * y], axis=0)     # (2C, M)
            s = jnp.sum(st, axis=1, keepdims=True)       # (2C, 1)
            inv_m = 1.0 / mlanes
            mean = s[:c] * inv_m
            var = jnp.maximum(s[c:] * inv_m - mean * mean, 0.0)
            yn = (y - mean) * lax.rsqrt(var + 1e-5) * p[:, 1:2] + p[:, 2:3]
            return jnp.where(yn > 0.0, yn, jnp.exp(jnp.minimum(yn, 0.0)) - 1.0)

        def pool(x, w_sp, sel_ref):
            # 2x2 / stride-2 max-pool: two shifted maxes, then anchor-selection matmul.
            xh = jnp.maximum(x, shift_lanes(x, 1))
            xv = jnp.maximum(xh, shift_lanes(xh, w_sp))
            return jnp.dot(xv.astype(bf16), sel_ref[...], preferred_element_type=jnp.float32)

        def upsample(x, u_ref):
            return jnp.dot(x.astype(bf16), u_ref[...], preferred_element_type=jnp.float32)

        x0 = x_ref[...]                                                          # (CP, M16)
        xin = bn_celu(conv(patches_roll(x0, W16, bm16), IW_IN, KSINGLE), IW_IN)
        x1 = bn_celu(conv(patches_roll(xin, W16, bm16), IW_1, KSINGLE), IW_1)
        xp1 = pool(x1, W16, sel1_ref)                                            # (CP, M8)
        x2 = bn_celu(conv(patches_roll(xp1, W8, bm8), IW_2, KSINGLE), IW_2)
        xp2 = pool(x2, W8, sel2_ref)                                             # (CP, M4)
        x3 = bn_celu(conv(patches_tap(xp2, 0), IW_3, KSINGLE), IW_3)
        x4 = bn_celu(conv(patches_tap(x3, 9), IW_4, KSINGLE), IW_4)              # dirate=2
        pd3 = jnp.concatenate([patches_tap(x4, 0), patches_tap(x3, 0)], axis=0)  # cat(x4,x3)
        x3d = bn_celu(conv(pd3, IW_D3, KDEC), IW_D3)
        x3u = upsample(x3d, up3_ref)                                             # (CP, M8)
        pd2 = jnp.concatenate([patches_roll(x3u, W8, bm8),
                               patches_roll(x2, W8, bm8)], axis=0)               # cat(x3u,x2)
        x2d = bn_celu(conv(pd2, IW_D2, KDEC), IW_D2)
        x2u = upsample(x2d, up2_ref)                                             # (CP, M16)
        pd1 = jnp.concatenate([patches_roll(x2u, W16, bm16),
                               patches_roll(x1, W16, bm16)], axis=0)             # cat(x2u,x1)
        x1d = bn_celu(conv(pd1, IW_D1, KDEC), IW_D1)
        o_ref[...] = (x1d + xin).astype(o_ref.dtype)

    call = pl.pallas_call(
        kernel,
        out_shape=jax.ShapeDtypeStruct((CP, M16), jnp.float32),
        in_specs=[_VMEM] * (1 + len(const_args)),
        out_specs=_VMEM,
    )
    # TODO(synk): for larger batch add an image-parallel grid axis (dimension_semantics=
    # ("parallel",)) so v7x's second TensorCore is used, and replace the dense O(M^2)
    # pool-selector / upsample operators with Kronecker-factored forms before raising
    # the spatial resolution (VMEM scaling hazard flagged in the perf review).

    def forward(x_nchw):
        n, c, hh, ww = x_nchw.shape
        x2d = jnp.transpose(x_nchw, (1, 0, 2, 3)).reshape(c, n * hh * ww)
        x2d = jnp.pad(x2d, ((0, CP - c), (0, 0)))
        out2d = call(x2d, *const_args)
        return jnp.transpose(out2d[:n_out].reshape(n_out, n, hh, ww), (1, 0, 2, 3))

    return jax.jit(forward)


# ----------------------------------------------------------------------------
# Parameter init (weights stored as (kh, kw, Cout, Cin)).
# ----------------------------------------------------------------------------
def init_convrelu_params(key, cin, cout):
    k1, k2, k3, k4 = jax.random.split(key, 4)
    fan_in = cin * 9
    return dict(
        w=jax.random.normal(k1, (3, 3, cout, cin), jnp.float32) / np.sqrt(fan_in),
        b=0.1 * jax.random.normal(k2, (cout,), jnp.float32),
        g=1.0 + 0.1 * jax.random.normal(k3, (cout,), jnp.float32),
        be=0.1 * jax.random.normal(k4, (cout,), jnp.float32),
    )


# ----------------------------------------------------------------------------
# Pure-XLA reference (same module semantics) for the in-script correctness check.
# ----------------------------------------------------------------------------
def _celu_ref(x):
    return jnp.where(x > 0, x, jnp.expm1(jnp.minimum(x, 0.0)))


def _conv_bn_celu_ref(x, p, dil=1):
    rhs = jnp.transpose(p["w"], (2, 3, 0, 1))                       # (Cout, Cin, kh, kw)
    y = lax.conv_general_dilated(
        x, rhs, window_strides=(1, 1), padding=[(dil, dil), (dil, dil)],
        rhs_dilation=(dil, dil), dimension_numbers=("NCHW", "OIHW", "NCHW"),
        precision=lax.Precision.HIGHEST)
    y = y + p["b"].reshape(1, -1, 1, 1)
    mean = jnp.mean(y, axis=(0, 2, 3), keepdims=True)
    var = jnp.var(y, axis=(0, 2, 3), keepdims=True)
    y = (y - mean) * lax.rsqrt(var + 1e-5) * p["g"].reshape(1, -1, 1, 1) \
        + p["be"].reshape(1, -1, 1, 1)
    return _celu_ref(y)


def _maxpool_ref(x):
    n, c, hh, ww = x.shape
    return x.reshape(n, c, hh // 2, 2, ww // 2, 2).max(axis=(3, 5))


def _upsample_ref(x):
    n, c, hh, ww = x.shape
    ah = jnp.asarray(_bilinear_matrix_np(hh))
    aw = jnp.asarray(_bilinear_matrix_np(ww))
    return jnp.einsum("ph,qw,nchw->ncpq", ah, aw, x, precision=lax.Precision.HIGHEST)


def resblocku_ref(x, params):
    xin = _conv_bn_celu_ref(x, params["conv_in"])
    x1 = _conv_bn_celu_ref(xin, params["conv1"])
    xp1 = _maxpool_ref(x1)
    x2 = _conv_bn_celu_ref(xp1, params["conv2"])
    xp2 = _maxpool_ref(x2)
    x3 = _conv_bn_celu_ref(xp2, params["conv3"])
    x4 = _conv_bn_celu_ref(x3, params["conv4"], dil=2)
    x3d = _conv_bn_celu_ref(jnp.concatenate([x4, x3], axis=1), params["dec3"])
    x3u = _upsample_ref(x3d)
    x2d = _conv_bn_celu_ref(jnp.concatenate([x3u, x2], axis=1), params["dec2"])
    x2u = _upsample_ref(x2d)
    x1d = _conv_bn_celu_ref(jnp.concatenate([x2u, x1], axis=1), params["dec1"])
    return x1d + xin


if __name__ == "__main__":
    key = jax.random.PRNGKey(0)
    keys = jax.random.split(key, 9)
    # ResBlockU(in_channels=3, midden_channels=12, out_channels=3)
    params = {
        "conv_in": init_convrelu_params(keys[0], 3, 3),
        "conv1":   init_convrelu_params(keys[1], 3, 12),
        "conv2":   init_convrelu_params(keys[2], 12, 12),
        "conv3":   init_convrelu_params(keys[3], 12, 12),
        "conv4":   init_convrelu_params(keys[4], 12, 12),
        "dec3":    init_convrelu_params(keys[5], 24, 12),
        "dec2":    init_convrelu_params(keys[6], 24, 12),
        "dec1":    init_convrelu_params(keys[7], 24, 3),
    }
    x = jax.random.normal(keys[8], (2, 3, 16, 16), jnp.float32)     # NCHW, like PyTorch

    roll_dir = _probe_roll_direction()
    forward = make_resblocku(params, nb=2, h=16, w=16, mid=12, roll_dir=roll_dir)

    out = jax.block_until_ready(forward(x))
    assert out.shape == (2, 3, 16, 16) and out.dtype == jnp.float32
    assert bool(jnp.all(jnp.isfinite(out)))

    # Numerical check against a pure-XLA f32 (HIGHEST precision) reference of the module.
    # Tolerance 1e-1 (was 5e-2 in the all-f32 kernel): MXU operands are now bf16 (f32
    # accumulate) through 11 chained conv->BN->CELU stages.
    ref = jax.block_until_ready(resblocku_ref(x, params))
    np.testing.assert_allclose(np.asarray(out), np.asarray(ref), rtol=1e-1, atol=1e-1)

    print("KERNEL_OK")
</pallas_src>

<mosaic_0001>
module attributes {stable_mosaic.version = 11 : i64} {
  func.func @kern(%arg0: memref<8x256xf32, #tpu.memory_space<vmem>>, %arg1: memref<8x256xf32, #tpu.memory_space<vmem>>) attributes {dimension_semantics = [], scalar_prefetch = 0 : i64, scratch_operands = 0 : i64, tpu.core_type = #tpu.core_type<tc>} {
    %c0 = arith.constant 0 : index
    %c0_0 = arith.constant 0 : index
    %0 = vector.load %arg0[%c0, %c0_0] : memref<8x256xf32, #tpu.memory_space<vmem>>, vector<8x256xf32>
    %c3_i32 = arith.constant 3 : i32
    %1 = tpu.dynamic_rotate %0 by %c3_i32 dim 1 : vector<8x256xf32>, i32 -> vector<8x256xf32>
    %c0_1 = arith.constant 0 : index
    %c0_2 = arith.constant 0 : index
    %2 = vector.load %arg1[%c0_1, %c0_2] : memref<8x256xf32, #tpu.memory_space<vmem>>, vector<8x256xf32>
    tpu.vector_store %arg1[%c0_1, %c0_2], %1 {strides = array<i32>} : memref<8x256xf32, #tpu.memory_space<vmem>>, vector<8x256xf32>,
    return
  }
}

</mosaic_0001>

<bundles_post_ra>
// kernel: tpu_custom_call.1
= control target key start
LH: loop header
LB: loop body
LE: loop exit
PB: predicated region body
PF: predicated region fallthrough
CT: control target
= control target key end

     0   :  { %6 = vsyncpa [#allocation3], 0  ;;  %s127_s0 = inlined_call_operand.hbm [shape: f32[8,256], index: 0, kind: input, shape index: {}]   ;;  %s128_s1 = inlined_call_operand.hbm [shape: f32[8,256], index: 1, kind: output, shape index: {}]  }
   0x1   :  { %7 = vsyncpa [#allocation4], 0  ;;  %s13_s8 = sshll.u32 %s127_s0, 4  ;;  %s108_s9 = smov [#allocation2]   ;;  %s14_s8 = int_to_ptr.hbm [resolvable:$true] %s13_s8 }
   0x2   :  { %s15_s10 = sshll.u32 %s108_s9, 4  ;;  %s16_s10 = int_to_ptr.vmem [resolvable:$true] %s15_s10 }
   0x3   :  { %18 = dma.hbm_to_vmem [thread:$0]  %s14_s8, 256, %s16_s10, [#allocation3]  }
   0x4   :  { %104 = dma.done.wait [#allocation3], 256  }
   0x5   :  { %105 = vsyncadd [#allocation3], 4294967040  ;;  %v23_v0 = vld [vmem:[#allocation2] sm:$0xff]  ;;  %s109_s11 = smov 3   ;;  %v24_v1 = vld [vmem:[#allocation2 + $0x8] sm:$0xff]  ;;  %v29_v2 = vlaneseq  ;;  %s110_s12 = smov [#allocation5]  }
   0x6   :  { %25 = vrot.lane.b32.xlu0 %v23_v0, %s109_s11  ;;  %s41_s13 = sshll.u32 %s110_s12, 4  ;;  %s43_s15 = sshll.u32 %s128_s1, 4  ;;  %s42_s13 = int_to_ptr.vmem [resolvable:$true] %s41_s13  ;;  %s44_s15 = int_to_ptr.hbm [resolvable:$true] %s43_s15 }
   0x7   :  { %v30_v4 = vand.u32 127, %v29_v2 }
   0x9   :  { %vm31_vm0 = vcmp.lt.s32.totalorder %v30_v4, 3 }
   0xe   :  { %27 = vrot.lane.b32.xlu0 %v24_v1, %s109_s11 }
  0x78   :  { %v26_v3 = vpop.permute.xlu0 %25 }
  0x80   :  { %v28_v5 = vpop.permute.xlu0 %27 }
  0x81   :  { %v32_v6 = vsel %vm31_vm0, %v26_v3, %v28_v5  ;;  %v33_v7 = vsel %vm31_vm0, %v28_v5, %v26_v3 }
  0x82   :  { %34 = vst [vmem:[#allocation5] sm:$0xff] %v33_v7 }
  0x83   :  { %35 = vst [vmem:[#allocation5 + $0x8] sm:$0xff] %v32_v6 }
  0x84   :  { %46 = dma.vmem_to_hbm [thread:$0]  %s42_s13, 256, %s44_s15, [#allocation4]  }
  0x85   :  { %106 = dma.done.wait [#allocation4], 256  }
  0x86   :  { %107 = vsyncadd [#allocation4], 4294967040 }
  0x87   :  { %51 = vsyncpa [#allocation3], 1 }
  0x88   :  { %52 = vsyncpa [#allocation4], 1 }

</bundles_post_ra>
